<compile_context>
chip_gen: v7x
topology: tpu7x:2x2x1
jax: 0.10.0
libtpu: 0.0.40
codegen_flags: <defaults>
</compile_context>

<pallas_src>
import math
import functools

import jax
import jax.numpy as jnp
from jax import lax
from jax.experimental import pallas as pl
from jax.experimental.pallas import tpu as pltpu


def _gelu_exact(x):
    # nn.GELU default = exact erf formulation (f32 elementwise).
    return 0.5 * x * (1.0 + lax.erf(x * (1.0 / math.sqrt(2.0))))


def mlp_kernel(x_ref, w1p_ref, b1p_ref, w2_ref, b2_ref, out_ref):
    # x_ref: (tile_n, F) bf16 -- native layout, single HBM pass.
    xb = x_ref[...]

    # Fused fc1: h^T = W1p @ x^T  (contract both operands over their last dim,
    # the same MXU pattern as q @ k^T).  Result (H, tile_n), f32 accumulate.
    hT = lax.dot_general(
        w1p_ref[...], xb,
        dimension_numbers=(((1,), (1,)), ((), ())),
        preferred_element_type=jnp.float32,
    ) + b1p_ref[...]

    hT = _gelu_exact(hT)                 # (H, tile_n) f32; Dropout(p=0) is identity.

    # fc2 (out_features == 1): f32 VPU multiply + sublane reduce, producing a
    # lane-dense (1, tile_n) row.  Kernel is HBM-bound, so keeping this off the
    # MXU costs nothing and preserves f32 precision on the GELU output.
    y = jnp.sum(hT * w2_ref[...], axis=0, keepdims=True) + b2_ref[...]
    out_ref[...] = y.astype(out_ref.dtype)


@functools.partial(jax.jit, static_argnames=("tile_n",))
def mlp_forward(x, params, tile_n=256):
    """x: (B, N, F) with B == 1 (reference forward squeezes dim 0).
    Returns (N, 1)."""
    B, N, F = x.shape
    assert B == 1, "reference forward squeezes dim 0; use B == 1"
    H = params["w1"].shape[0]

    # Ragged / small N fallback: a full-extent block is always legal.
    tile_n = min(tile_n, N)
    if N % tile_n != 0:
        tile_n = N
    grid = (N // tile_n,)

    # ---- Wrapper-side algebra (f32), done once under jit -------------------
    # v = Wv x + bv ; x <- v + x0 ; fc1 pre-act = W1 x + b1
    #   => W1p = W1 @ (Wv + I),  b1p = W1 @ bv + b1   (exact in f32)
    eye = jnp.eye(F, dtype=jnp.float32)
    w1p = (params["w1"].astype(jnp.float32)
           @ (params["wv"].astype(jnp.float32) + eye)).astype(jnp.bfloat16)   # (H, F)
    b1p = (params["w1"].astype(jnp.float32) @ params["bv"].astype(jnp.float32)
           + params["b1"].astype(jnp.float32)).reshape(H, 1)                  # (H, 1) f32
    w2 = params["w2"].astype(jnp.float32).reshape(H, 1)                       # (H, 1) f32
    b2 = params["b2"].astype(jnp.float32).reshape(1, 1)                       # (1, 1) f32

    # x in native (N, F) layout; bf16 halves the dominant HBM stream.
    # (In production, produce x in bf16 upstream so this cast fuses away.)
    x2d = x.reshape(N, F)
    if x2d.dtype != jnp.bfloat16:
        x2d = x2d.astype(jnp.bfloat16)

    def resident(shape):
        # Full-extent block, same index every grid step -> stays VMEM-resident.
        return pl.BlockSpec(shape, lambda i: (0, 0))

    out_row = pl.pallas_call(
        mlp_kernel,
        out_shape=jax.ShapeDtypeStruct((1, N), jnp.float32),
        grid_spec=pltpu.PrefetchScalarGridSpec(
            num_scalar_prefetch=0,
            grid=grid,
            in_specs=[
                pl.BlockSpec((tile_n, F), lambda i: (i, 0)),   # x, tiled over tokens
                resident((H, F)),   # W1p (bf16)
                resident((H, 1)),   # b1p (f32)
                resident((H, 1)),   # W2 column (f32, VPU path)
                resident((1, 1)),   # b2
            ],
            out_specs=pl.BlockSpec((1, tile_n), lambda i: (0, i)),  # lane-dense row
        ),
        compiler_params=pltpu.CompilerParams(
            dimension_semantics=("parallel",),   # >=2 tiles shard across v7x's 2 TCs
            vmem_limit_bytes=32 * 1024 * 1024,   # ample: tiles + residents are < 1 MiB
        ),
    )(x2d, w1p, b1p, w2, b2)

    return out_row.reshape(N, 1)   # (1, N) contiguous -> (N, 1), no data movement


def init_params(key, in_features, hidden_features):
    """Deterministic synthetic params in PyTorch nn.Linear layout: W (out, in), b (out,)."""
    ks = jax.random.split(key, 10)

    def lin(kw, kb, fan_in, fan_out):
        bound = 1.0 / math.sqrt(fan_in)
        w = jax.random.uniform(kw, (fan_out, fan_in), jnp.float32, -bound, bound)
        b = jax.random.uniform(kb, (fan_out,), jnp.float32, -bound, bound)
        return w, b

    wq, bq = lin(ks[0], ks[1], in_features, in_features)   # only used by the reference
    wk, bk = lin(ks[2], ks[3], in_features, in_features)   # (kernel drops q/k: exact no-op)
    wv, bv = lin(ks[4], ks[5], in_features, in_features)
    w1, b1 = lin(ks[6], ks[7], in_features, hidden_features)
    w2, b2 = lin(ks[8], ks[9], hidden_features, 1)          # pred=True -> out dim 1
    return dict(wq=wq, bq=bq, wk=wk, bk=bk, wv=wv, bv=bv,
                w1=w1, b1=b1, w2=w2, b2=b2)


def mlp_reference(x, params):
    """Pure-JAX f32 reference mirroring the PyTorch forward literally
    (including the q/k/softmax branch the kernel eliminates)."""
    x0 = x                                                      # (1, N, F)
    q = (x @ params["wq"].T + params["bq"])[:, :, None, :]      # (1, N, 1, F)
    k = (x @ params["wk"].T + params["bk"])[:, :, None, :]
    v = (x @ params["wv"].T + params["bv"])[:, :, None, :]
    attn = q @ jnp.swapaxes(k, -2, -1)                          # (1, N, 1, 1)
    attn = jax.nn.softmax(attn, axis=-1)                        # == 1.0
    xa = (attn @ v)[:, :, 0, :] + x0
    h = jax.nn.gelu(xa @ params["w1"].T + params["b1"], approximate=False)
    y = h @ params["w2"].T + params["b2"]
    return y[0]                                                 # squeeze(0) -> (N, 1)


if __name__ == "__main__":
    key = jax.random.PRNGKey(0)
    k_x, k_p = jax.random.split(key)

    B, N, F, H = 1, 512, 32, 64
    x = jax.random.normal(k_x, (B, N, F), jnp.float32)
    params = init_params(k_p, F, H)

    out = jax.block_until_ready(mlp_forward(x, params, tile_n=256))
    ref = mlp_reference(x, params)

    assert out.shape == (N, 1), out.shape
    max_err = float(jnp.max(jnp.abs(out - ref)))
    # bf16 activations + bf16 folded fc1 weights (f32 accumulation) vs f32 reference.
    assert jnp.allclose(out, ref, atol=5e-2, rtol=5e-2), max_err

    print("KERNEL_OK")
</pallas_src>

<mosaic_0001>
module attributes {stable_mosaic.version = 11 : i64} {
  func.func @mlp_kernel(%arg0: i32, %arg1: memref<256x32xbf16, #tpu.memory_space<vmem>>, %arg2: memref<64x32xbf16, #tpu.memory_space<vmem>>, %arg3: memref<64x1xf32, #tpu.memory_space<vmem>>, %arg4: memref<64x1xf32, #tpu.memory_space<vmem>>, %arg5: memref<1x1xf32, #tpu.memory_space<vmem>>, %arg6: memref<1x256xf32, #tpu.memory_space<vmem>>) attributes {dimension_semantics = [#tpu.dimension_semantics<parallel>], iteration_bounds = array<i64: 2>, scalar_prefetch = 0 : i64, scratch_operands = 0 : i64, tpu.core_type = #tpu.core_type<tc>, window_params = [{transform_indices = @transform_0, window_bounds = array<i64: 256, 32>}, {pipeline_mode = #tpu.pipeline_mode<synchronous>, transform_indices = @transform_1, window_bounds = array<i64: 64, 32>}, {pipeline_mode = #tpu.pipeline_mode<synchronous>, transform_indices = @transform_2, window_bounds = array<i64: 64, 1>}, {pipeline_mode = #tpu.pipeline_mode<synchronous>, transform_indices = @transform_3, window_bounds = array<i64: 64, 1>}, {pipeline_mode = #tpu.pipeline_mode<synchronous>, transform_indices = @transform_4, window_bounds = array<i64: 1, 1>}, {transform_indices = @transform_5, window_bounds = array<i64: 1, 256>}]} {
    %c0 = arith.constant 0 : index
    %c0_0 = arith.constant 0 : index
    %0 = vector.load %arg1[%c0, %c0_0] : memref<256x32xbf16, #tpu.memory_space<vmem>>, vector<256x32xbf16>
    %c0_1 = arith.constant 0 : index
    %c0_2 = arith.constant 0 : index
    %1 = vector.load %arg2[%c0_1, %c0_2] : memref<64x32xbf16, #tpu.memory_space<vmem>>, vector<64x32xbf16>
    %cst = arith.constant dense<0.000000e+00> : vector<64x256xf32>
    %2 = tpu.matmul %1, %0, %cst {dimension_numbers = #tpu.dot_dimension_numbers<[1], [1], [0], [0], [0, 0, 1, 0], [], []>} : vector<64x32xbf16>, vector<256x32xbf16>, vector<64x256xf32> -> vector<64x256xf32>
    %c0_3 = arith.constant 0 : index
    %c0_4 = arith.constant 0 : index
    %3 = vector.load %arg3[%c0_3, %c0_4] : memref<64x1xf32, #tpu.memory_space<vmem>>, vector<64x1xf32>
    %4 = vector.broadcast %3 : vector<64x1xf32> to vector<64x256xf32>
    %5 = arith.addf %2, %4 : vector<64x256xf32>
    %cst_5 = arith.constant 5.000000e-01 : f32
    %6 = vector.broadcast %cst_5 : f32 to vector<64x256xf32>
    %7 = arith.mulf %6, %5 : vector<64x256xf32>
    %cst_6 = arith.constant 0.707106769 : f32
    %8 = vector.broadcast %cst_6 : f32 to vector<64x256xf32>
    %9 = arith.mulf %5, %8 : vector<64x256xf32>
    %10 = math.erf %9 : vector<64x256xf32>
    %cst_7 = arith.constant 1.000000e+00 : f32
    %11 = vector.broadcast %cst_7 : f32 to vector<64x256xf32>
    %12 = arith.addf %11, %10 : vector<64x256xf32>
    %13 = arith.mulf %7, %12 : vector<64x256xf32>
    %c0_8 = arith.constant 0 : index
    %c0_9 = arith.constant 0 : index
    %14 = vector.load %arg4[%c0_8, %c0_9] : memref<64x1xf32, #tpu.memory_space<vmem>>, vector<64x1xf32>
    %15 = vector.broadcast %14 : vector<64x1xf32> to vector<64x256xf32>
    %16 = arith.mulf %13, %15 : vector<64x256xf32>
    %cst_10 = arith.constant dense<0.000000e+00> : vector<256xf32>
    %17 = vector.multi_reduction <add>, %16, %cst_10 [0] : vector<64x256xf32> to vector<256xf32>
    %18 = vector.shape_cast %17 : vector<256xf32> to vector<1x256xf32>
    %c0_11 = arith.constant 0 : index
    %c0_12 = arith.constant 0 : index
    %19 = vector.load %arg5[%c0_11, %c0_12] : memref<1x1xf32, #tpu.memory_space<vmem>>, vector<1x1xf32>
    %20 = vector.broadcast %19 : vector<1x1xf32> to vector<1x256xf32>
    %21 = arith.addf %18, %20 : vector<1x256xf32>
    %c0_13 = arith.constant 0 : index
    %c0_14 = arith.constant 0 : index
    %22 = vector.load %arg6[%c0_13, %c0_14] : memref<1x256xf32, #tpu.memory_space<vmem>>, vector<1x256xf32>
    tpu.vector_store %arg6[%c0_13, %c0_14], %21 {strides = array<i32>} : memref<1x256xf32, #tpu.memory_space<vmem>>, vector<1x256xf32>,
    return
  }
  func.func @transform_0(%arg0: i32) -> (i32, i32) {
    %c0_i32 = arith.constant 0 : i32
    %c0_i32_0 = arith.constant 0 : i32
    return %arg0, %c0_i32 : i32, i32
  }
  func.func @transform_1(%arg0: i32) -> (i32, i32) {
    %c0_i32 = arith.constant 0 : i32
    %c0_i32_0 = arith.constant 0 : i32
    %c0_i32_1 = arith.constant 0 : i32
    return %c0_i32, %c0_i32_0 : i32, i32
  }
  func.func @transform_2(%arg0: i32) -> (i32, i32) {
    %c0_i32 = arith.constant 0 : i32
    %c0_i32_0 = arith.constant 0 : i32
    %c0_i32_1 = arith.constant 0 : i32
    return %c0_i32, %c0_i32_0 : i32, i32
  }
  func.func @transform_3(%arg0: i32) -> (i32, i32) {
    %c0_i32 = arith.constant 0 : i32
    %c0_i32_0 = arith.constant 0 : i32
    %c0_i32_1 = arith.constant 0 : i32
    return %c0_i32, %c0_i32_0 : i32, i32
  }
  func.func @transform_4(%arg0: i32) -> (i32, i32) {
    %c0_i32 = arith.constant 0 : i32
    %c0_i32_0 = arith.constant 0 : i32
    %c0_i32_1 = arith.constant 0 : i32
    return %c0_i32, %c0_i32_0 : i32, i32
  }
  func.func @transform_5(%arg0: i32) -> (i32, i32) {
    %c0_i32 = arith.constant 0 : i32
    %c0_i32_0 = arith.constant 0 : i32
    return %c0_i32, %arg0 : i32, i32
  }
}

</mosaic_0001>

<bundles_post_ra>
// kernel: mlp_forward.1
= control target key start
LH: loop header
LB: loop body
LE: loop exit
PB: predicated region body
PF: predicated region fallthrough
CT: control target
= control target key end

     0   :  { %s1383_s0 = inlined_call_operand.vmem [shape: bf16[512,32], index: 0, kind: input, shape index: {}]   ;;  %s1384_s1 = inlined_call_operand.vmem [shape: bf16[64,32], index: 1, kind: input, shape index: {}]   ;;  %s1385_s2 = inlined_call_operand.vmem [shape: f32[64,1], index: 2, kind: input, shape index: {}]   ;;  %s1386_s3 = inlined_call_operand.vmem [shape: f32[64,1], index: 3, kind: input, shape index: {}]   ;;  %s1387_s4 = inlined_call_operand.<no memory space> [shape: f32[1,1], index: 4, kind: input, shape index: {}]   ;;  %s1388_s5 = inlined_call_operand.hbm [shape: f32[1,512], index: 5, kind: output, shape index: {}]  }
   0x1   :  { %v10_v0 = vstv %s1387_s4 }
   0x2   :  { %11 = vst [vmem:[#allocation2] sm:$0x1] %v10_v0 }
   0x3   :  { %12 = vsyncpa [#allocation4], 0 }
   0x4   :  { %14 = vsyncpa [#allocation4 + $0x1], 0  ;;  %s1118_s20 = smov 0   ;;  %s1120_s21 = smov 0  }
   0x5   :  { %s1122_s22 = smov 0   ;;  %s1124_s23 = smov 0  }
   0x6 LB: > { %s829_s4 = sadd.s32 4294967295, %s1080_s23   ;;  %s830_s24 = sadd.s32 4294967294, %s1080_s23   ;;  %s1080_s23 = sphi %s1124_s23, %s1394_s23   ;;  %s1076_s22 = sphi %s1122_s22, %s1393_s22   ;;  %s1072_s21 = sphi %s1120_s21, %s1392_s21   ;;  %s1068_s20 = sphi %s1118_s20, %s1391_s20  }
   0x7   : > { %s1141_s25 = sadd.s32 1, %s1080_s23   ;;  %s137_s26 = sadd.s32 1, %s1076_s22 }
   0x8   : > { %s134_s27 = ssub.s32 %s1080_s23, %s1141_s25  ;;  %p147_p0 = scmp.ne.s32.totalorder %s1076_s22, %s1072_s21 }
   0x9   : > { %p135_p1 = scmp.eq.s32.totalorder %s134_s27, 0  ;;  %p148_p2 = scmp.eq.s32.totalorder %s829_s4, 1 }
   0xa   : > { %p153_p3 = scmp.ne.s32.totalorder %s1072_s21, %s1068_s20  ;;  %p154_p4 = scmp.eq.s32.totalorder %s830_s24, 1 }
   0xb   : > { %s1151_s28 = scalar_select %p135_p1, %s1076_s22, %s137_s26  }
   0xc   : > { %p1153_p5 = por %p148_p2, %p147_p0  ;;  %p1157_p6 = por %p154_p4, %p153_p3 }
   0xd   : > { %p833_p7 = scmp.ge.s32.totalorder %s1080_s23, 1  ;;  %p193_p8 = scmp.lt.s32.totalorder %s1080_s23, 3 }
   0xf   : > { %p194_p9 = pnand %p833_p7, %p193_p8 }
  0x10   : > { %s1163_s6 = sshll.u32 (!%p194_p9), %s829_s4, 5  ;;  %vm417_vm0 = vcmask (!%p194_p9), 261120   ;;  %v1169_v1 = vld [vmem:[%s1384_s1] sm:$0xff] (!%p194_p9)   ;;  %v1174_v2 = vld [vmem:[%s1384_s1 + $0x10] sm:$0xff] (!%p194_p9)   ;;  %v1082_v3 = vmov (!%p194_p9), 0   ;;  %v270_v6 = vld [vmem:[%s1385_s2 + $0x8] sm:$0xff] (!%p194_p9) }
  0x11   : > { %197 = sbr.rel (%p194_p9) target bundleno = 386 (0x182), region = 40  ;;  %p222_p10 = scmp.lt.s32.totalorder (!%p194_p9), %s1163_s6, 63  ;;  %883 = vmatprep.mubr.msk.bf16.mxu0 (!%p194_p9), %vm417_vm0, %v1169_v1  ;;  %964 = vset.pattern.permute.xlu0 (!%p194_p9), %v1082_v3  ;;  %v269_v4 = vld [vmem:[%s1385_s2] sm:$0xff] (!%p194_p9)  ;;  %v271_v5 = vld [vmem:[%s1385_s2 + $0x10] sm:$0xff] (!%p194_p9)  ;;  %v272_v7 = vld [vmem:[%s1385_s2 + $0x18] sm:$0xff] (!%p194_p9) }
  0x12   : > { %887 = vmatprep.mubr.msk.bf16.mxu1 (!%p194_p9), %vm417_vm0, %v1174_v2  ;;  %965 = vset.pattern.permute.xlu1 (!%p194_p9), %v1082_v3  ;;  %v273_v12 = vld [vmem:[%s1385_s2 + $0x20] sm:$0xff] (!%p194_p9)  ;;  %v274_v13 = vld [vmem:[%s1385_s2 + $0x28] sm:$0xff] (!%p194_p9)  ;;  %v275_v15 = vld [vmem:[%s1385_s2 + $0x30] sm:$0xff] (!%p194_p9)  ;;  %s1341_s8 = scalar_lea.hbm (!%p194_p9), %s1388_s5, %s1163_s6 }
  0x13   : > { %279 = vperm.xlu0 (!%p194_p9), %964, %v269_v4   ;;  %289 = vperm.xlu1 (!%p194_p9), %965, %v271_v5   ;;  %v631_v18 = vld [vmem:[%s1386_s3] sm:$0xff] (!%p194_p9)  ;;  %v276_v20 = vld [vmem:[%s1385_s2 + $0x38] sm:$0xff] (!%p194_p9)  ;;  %v633_v21 = vld [vmem:[%s1386_s3 + $0x10] sm:$0xff] (!%p194_p9) }
  0x14   : > { %v632_v24 = vld [vmem:[%s1386_s3 + $0x8] sm:$0xff] (!%p194_p9)  ;;  %v635_v25 = vld [vmem:[%s1386_s3 + $0x20] sm:$0xff] (!%p194_p9)  ;;  %v634_v27 = vld [vmem:[%s1386_s3 + $0x18] sm:$0xff] (!%p194_p9) }
  0x15   : > { %v637_v28 = vld [vmem:[%s1386_s3 + $0x30] sm:$0xff] (!%p194_p9)  ;;  %v636_v31 = vld [vmem:[%s1386_s3 + $0x28] sm:$0xff] (!%p194_p9)  ;;  %v721_v32 = vld [vmem:[#allocation2] sm:$0x1] (!%p194_p9) }
  0x16   : > { %v638_v34 = vld [vmem:[%s1386_s3 + $0x38] sm:$0xff] (!%p194_p9)  ;;  %v984_v45 = vld [vmem:[%s1384_s1 + $0x8] sm:$0xff] (!%p194_p9)  }
  0x17   : > { %284 = vperm.xlu0 (!%p194_p9), %964, %v270_v6   ;;  %294 = vperm.xlu1 (!%p194_p9), %965, %v272_v7   ;;  %v985_v46 = vld [vmem:[%s1384_s1 + $0x18] sm:$0xff] (!%p194_p9)  }
  0x18   : > { %s223_s11 = scalar_select %p222_p10, %s1163_s6, 63 }
  0x1a   : > { %s836_s14 = sshll.u32 %s223_s11, 2  ;;  %s1084_s11 = smov [#allocation3]  }
  0x1b   : > { %s1190_s19 = scalar_lea.vmem %s1383_s0, %s836_s14  ;;  %299 = vperm.xlu0 %964, %v273_v12   ;;  %304 = vperm.xlu1 %965, %v274_v13   ;;  %s1022_s12 = sshll.u32 %s1084_s11, 4  ;;  %s1023_s12 = int_to_ptr.vmem [resolvable:$false] %s1022_s12 }
  0x1c   : > { %v966_v8 = vld [vmem:[%s1190_s19 + $0x40] sm:$0xff]   ;;  %v968_v10 = vld [vmem:[%s1190_s19 + $0x48] sm:$0xff]   ;;  %v970_v17 = vld [vmem:[%s1190_s19 + $0x50] sm:$0xff]   ;;  %s1024_s13 = scalar_lea.vmem %s1023_s12, 64 }
  0x1d   : > { %v967_v9 = vld [vmem:[%s1190_s19] sm:$0xff]   ;;  %907 = vmatprep.subr.msk.bf16.mxu0 %vm417_vm0, %v966_v8  ;;  %908 = vmatprep.subr.msk.bf16.mxu1 %vm417_vm0, %v966_v8  ;;  %v969_v14 = vld [vmem:[%s1190_s19 + $0x8] sm:$0xff]   ;;  %v971_v19 = vld [vmem:[%s1190_s19 + $0x10] sm:$0xff]  }
  0x1e   : > { %v431_v11 = vsel %vm417_vm0, %v967_v9, 0  ;;  %v434_v16 = vsel %vm417_vm0, %v969_v14, 0  ;;  %v437_v22 = vsel %vm417_vm0, %v971_v19, 0  ;;  %v972_v23 = vld [vmem:[%s1190_s19 + $0x58] sm:$0xff]   ;;  %v974_v30 = vld [vmem:[%s1190_s19 + $0x60] sm:$0xff]   ;;  %v976_v36 = vld [vmem:[%s1190_s19 + $0x68] sm:$0xff]  }
  0x1f   : > { %868 = vmatpush3.bf16.xpose.msra.mxu0 %v431_v11  ;;  %899 = vmatpush3.bf16.xpose.msra.mxu1 %v431_v11  ;;  %v973_v26 = vld [vmem:[%s1190_s19 + $0x18] sm:$0xff]   ;;  %v975_v33 = vld [vmem:[%s1190_s19 + $0x20] sm:$0xff]   ;;  %v977_v37 = vld [vmem:[%s1190_s19 + $0x28] sm:$0xff]  }
  0x20   : > { %909 = vmatprep.subr.msk.bf16.mxu0 %vm417_vm0, %v968_v10  ;;  %910 = vmatprep.subr.msk.bf16.mxu1 %vm417_vm0, %v968_v10  ;;  %v440_v29 = vsel %vm417_vm0, %v973_v26, 0  ;;  %v443_v35 = vsel %vm417_vm0, %v975_v33, 0  ;;  %v446_v38 = vsel %vm417_vm0, %v977_v37, 0  ;;  %v978_v39 = vld [vmem:[%s1190_s19 + $0x70] sm:$0xff]   ;;  %v980_v42 = vld [vmem:[%s1190_s19 + $0x78] sm:$0xff]  }
  0x21   : > { %309 = vperm.xlu0 %964, %v275_v15   ;;  %314 = vperm.xlu1 %965, %v276_v20   ;;  %v979_v40 = vld [vmem:[%s1190_s19 + $0x30] sm:$0xff]   ;;  %v981_v43 = vld [vmem:[%s1190_s19 + $0x38] sm:$0xff]   ;;  %s218_s19 = sand.u32 1, %s1072_s21  }
  0x22   : > { %v449_v41 = vsel %vm417_vm0, %v979_v40, 0  ;;  %v452_v44 = vsel %vm417_vm0, %v981_v43, 0  ;;  %s834_s4 = sshll.u32 %s218_s19, 1  ;;  %s757_s9 = scalar_lea.sflag [#allocation4], %s218_s19 }
  0x23   : > { %s220_s24 = scalar_lea.vmem [#allocation3], %s834_s4 }
  0x24   : > { %s771_s26 = sshll.u32 %s220_s24, 4  ;;  %s1343_s26 = int_to_ptr.vmem [resolvable:$true] %s771_s26 }
  0x25   : > { %641 = vperm.xlu0 %964, %v631_v18   ;;  %646 = vperm.xlu1 %965, %v632_v24   ;;  %s1018_s10 = scalar_lea.vmem %s1343_s26, 32  ;;  %p1025_p0 = scmp.lt.s32.totalorder %s1343_s26, %s1023_s12 }
  0x26   : > { %p1019_p11 = scmp.ne.s32.totalorder %s1343_s26, %s1018_s10  ;;  %p1026_p1 = scmp.lt.s32.totalorder %s1024_s13, %s1018_s10 }
  0x27   : > { %870 = vmatpush3.bf16.xpose.msra.mxu0 %v434_v16  ;;  %900 = vmatpush3.bf16.xpose.msra.mxu1 %v434_v16 }
  0x28   : > { %911 = vmatprep.subr.msk.bf16.mxu0 %vm417_vm0, %v970_v17  ;;  %912 = vmatprep.subr.msk.bf16.mxu1 %vm417_vm0, %v970_v17  ;;  %p1020_p12 = pnand %p1019_p11, %p1153_p5  ;;  %p1027_p2 = por %p1026_p1, %p1025_p0 }
  0x29   : > { %651 = vperm.xlu0 %964, %v633_v21   ;;  %656 = vperm.xlu1 %965, %v634_v27  }
  0x2a   : > { %p1021_p13 = pneg %p1020_p12 }
  0x2c   : > { %p1028_p3 = pnand %p1027_p2, %p1021_p13 }
  0x2d   : > { %661 = vperm.xlu0 %964, %v635_v25   ;;  %666 = vperm.xlu1 %965, %v636_v31  }
  0x2f   : > { %872 = vmatpush3.bf16.xpose.msra.mxu0 %v437_v22  ;;  %901 = vmatpush3.bf16.xpose.msra.mxu1 %v437_v22 }
  0x30   : > { %913 = vmatprep.subr.msk.bf16.mxu0 %vm417_vm0, %v972_v23  ;;  %914 = vmatprep.subr.msk.bf16.mxu1 %vm417_vm0, %v972_v23 }
  0x31   : > { %671 = vperm.xlu0 %964, %v637_v28   ;;  %676 = vperm.xlu1 %965, %v638_v34  }
  0x35   : > { %724 = vperm.xlu0 %964, %v721_v32  }
  0x37   : > { %874 = vmatpush3.bf16.xpose.msra.mxu0 %v440_v29  ;;  %902 = vmatpush3.bf16.xpose.msra.mxu1 %v440_v29 }
  0x38   : > { %915 = vmatprep.subr.msk.bf16.mxu0 %vm417_vm0, %v974_v30  ;;  %916 = vmatprep.subr.msk.bf16.mxu1 %vm417_vm0, %v974_v30 }
  0x3f   : > { %876 = vmatpush3.bf16.xpose.msra.mxu0 %v443_v35  ;;  %903 = vmatpush3.bf16.xpose.msra.mxu1 %v443_v35 }
  0x40   : > { %917 = vmatprep.subr.msk.bf16.mxu0 %vm417_vm0, %v976_v36  ;;  %918 = vmatprep.subr.msk.bf16.mxu1 %vm417_vm0, %v976_v36 }
  0x47   : > { %878 = vmatpush3.bf16.xpose.msra.mxu0 %v446_v38  ;;  %904 = vmatpush3.bf16.xpose.msra.mxu1 %v446_v38 }
  0x48   : > { %919 = vmatprep.subr.msk.bf16.mxu0 %vm417_vm0, %v978_v39  ;;  %920 = vmatprep.subr.msk.bf16.mxu1 %vm417_vm0, %v978_v39 }
  0x4f   : > { %880 = vmatpush3.bf16.xpose.msra.mxu0 %v449_v41  ;;  %905 = vmatpush3.bf16.xpose.msra.mxu1 %v449_v41 }
  0x50   : > { %921 = vmatprep.subr.msk.bf16.mxu0 %vm417_vm0, %v980_v42  ;;  %922 = vmatprep.subr.msk.bf16.mxu1 %vm417_vm0, %v980_v42 }
  0x57   : > { %882 = vmatpush3.bf16.xpose.msra.mxu0 %v452_v44  ;;  %906 = vmatpush3.bf16.xpose.msra.mxu1 %v452_v44 }
  0x5e   : > { %884 = vmatmul.mubr.msk.bf16.vlgmr.msra.gmra.mrb[0].mxu0 %vm417_vm0, %v1169_v1  ;;  %888 = vmatmul.mubr.msk.bf16.vlgmr.msra.gmra.mrb[0].mxu1 %vm417_vm0, %v1174_v2 }
  0x5f   : > { %885 = vmatprep.mubr.msk.bf16.mxu0 %vm417_vm0, %v984_v45  ;;  %889 = vmatprep.mubr.msk.bf16.mxu1 %vm417_vm0, %v985_v46 }
  0x66   : > { %886 = vmatmul.mubr.msk.bf16.gmra.mrb[4].mxu0 %vm417_vm0, %v984_v45  ;;  %890 = vmatmul.mubr.msk.bf16.gmra.mrb[4].mxu1 %vm417_vm0, %v985_v46 }
  0x92   : > { %v280_v47 = vpop.permute.xlu0 %279  ;;  %v290_v48 = vpop.permute.xlu1 %289 }
  0x96   : > { %v285_v49 = vpop.permute.xlu0 %284  ;;  %v295_v50 = vpop.permute.xlu1 %294 }
  0x9a   : > { %v300_v51 = vpop.permute.xlu0 %299  ;;  %v305_v63 = vpop.permute.xlu1 %304 }
  0xa0   : > { %v310_v10 = vpop.permute.xlu0 %309  ;;  %v315_v28 = vpop.permute.xlu1 %314 }
 0x131   : > { %v512_v52 = vpop.f32.mrb[0].mxu0  ;;  %v532_v53 = vpop.f32.mrb[0].mxu1 }
 0x132   : > { %v513_v54 = vadd.f32 %v512_v52, %v280_v47  ;;  %v1288_v55 = vadd.f32 %v532_v53, %v300_v51  ;;  %v514_v56 = vpop.f32.mrb[1].mxu0  ;;  %v534_v57 = vpop.f32.mrb[1].mxu1 }
 0x133   : > { %v1290_v58 = vadd.f32 %v514_v56, %v280_v47  ;;  %v1292_v59 = vadd.f32 %v534_v57, %v300_v51  ;;  %v516_v60 = vpop.f32.mrb[2].mxu0  ;;  %v536_v61 = vpop.f32.mrb[2].mxu1 }
 0x134   : > { %v567_v62 = vmul.f32 0.70710677, %v513_v54  ;;  %v575_v0 = vmul.f32 0.70710677, %v1288_v55  ;;  %v517_v2 = vadd.f32 %v516_v60, %v285_v49  ;;  %v1296_v3 = vadd.f32 %v536_v61, %v305_v63  ;;  %v518_v4 = vpop.f32.mrb[3].mxu0  ;;  %v538_v5 = vpop.f32.mrb[3].mxu1 }
 0x135   : > { %v568_v1 = vmul.f32 0.70710677, %v1290_v58  ;;  %v576_v6 = vmul.f32 0.70710677, %v1292_v59  ;;  %v1299_v7 = vadd.f32 %v518_v4, %v285_v49  ;;  %v1301_v8 = vadd.f32 %v538_v5, %v305_v63  ;;  %v642_v47 = vpop.permute.xlu0 %641 }
 0x136   : > { %986 = verf.f32 %v567_v62  ;;  %v569_v9 = vmul.f32 0.70710677, %v517_v2  ;;  %v577_v11 = vmul.f32 0.70710677, %v1296_v3  ;;  %v551_v41 = vmul.f32 0.5, %v513_v54  ;;  %v647_v54 = vpop.permute.xlu1 %646 }
 0x137   : > { %988 = verf.f32 %v568_v1  ;;  %v570_v12 = vmul.f32 0.70710677, %v1299_v7  ;;  %v578_v17 = vmul.f32 0.70710677, %v1301_v8  ;;  %v552_v45 = vmul.f32 0.5, %v1290_v58 }
 0x138   : > { %990 = verf.f32 %v575_v0  ;;  %v553_v49 = vmul.f32 0.5, %v517_v2  ;;  %v554_v60 = vmul.f32 0.5, %v1299_v7 }
 0x139   : > { %v522_v13 = vpop.f32.mrb[4].mxu0  ;;  %992 = verf.f32 %v569_v9  ;;  %v542_v15 = vpop.f32.mrb[4].mxu1 }
 0x13a   : > { %v523_v14 = vadd.f32 %v522_v13, %v290_v48  ;;  %v524_v16 = vpop.f32.mrb[5].mxu0  ;;  %994 = verf.f32 %v576_v6  ;;  %v1306_v18 = vadd.f32 %v542_v15, %v310_v10  ;;  %v544_v20 = vpop.f32.mrb[5].mxu1 }
 0x13b   : > { %v525_v19 = vadd.f32 %v524_v16, %v290_v48  ;;  %v526_v21 = vpop.f32.mrb[6].mxu0  ;;  %996 = verf.f32 %v570_v12  ;;  %v1308_v23 = vadd.f32 %v544_v20, %v310_v10  ;;  %v546_v24 = vpop.f32.mrb[6].mxu1  ;;  %v559_v20 = vmul.f32 0.5, %v1288_v55 }
 0x13c   : > { %v571_v22 = vmul.f32 0.70710677, %v523_v14  ;;  %v528_v25 = vpop.f32.mrb[7].mxu0  ;;  %998 = verf.f32 %v577_v11  ;;  %v579_v26 = vmul.f32 0.70710677, %v1306_v18  ;;  %v548_v27 = vpop.f32.mrb[7].mxu1  ;;  %v1312_v31 = vadd.f32 %v526_v21, %v295_v50 }
 0x13d   : > { %v572_v29 = vmul.f32 0.70710677, %v525_v19  ;;  %v580_v30 = vmul.f32 0.70710677, %v1308_v23  ;;  %v1314_v32 = vadd.f32 %v546_v24, %v315_v28  ;;  %v1316_v33 = vadd.f32 %v528_v25, %v295_v50  ;;  %v652_v12 = vpop.permute.xlu0 %651  ;;  %v657_v24 = vpop.permute.xlu1 %656 }
 0x13e   : > { %1000 = verf.f32 %v571_v22  ;;  %v573_v36 = vmul.f32 0.70710677, %v1312_v31  ;;  %v1320_v39 = vadd.f32 %v548_v27, %v315_v28  ;;  %v555_v63 = vmul.f32 0.5, %v523_v14 }
 0x13f   : > { %1002 = verf.f32 %v578_v17  ;;  %v581_v38 = vmul.f32 0.70710677, %v1314_v32  ;;  %v574_v43 = vmul.f32 0.70710677, %v1316_v33  ;;  %v556_v10 = vmul.f32 0.5, %v525_v19 }
 0x140   : > { %v987_v34 = vpop.eup %986  ;;  %1004 = verf.f32 %v572_v29  ;;  %v582_v53 = vmul.f32 0.70710677, %v1320_v39  ;;  %v560_v14 = vmul.f32 0.5, %v1292_v59  ;;  %v561_v19 = vmul.f32 0.5, %v1296_v3 }
 0x141   : > { %v599_v35 = vadd.f32 1.0, %v987_v34  ;;  %1006 = verf.f32 %v579_v26  ;;  %v989_v37 = vpop.eup %988  ;;  %v557_v34 = vmul.f32 0.5, %v1312_v31  ;;  %v563_v3 = vmul.f32 0.5, %v1306_v18 }
 0x142   : > { %1008 = verf.f32 %v580_v30  ;;  %v991_v40 = vpop.eup %990  ;;  %v600_v42 = vadd.f32 1.0, %v989_v37  ;;  %v562_v30 = vmul.f32 0.5, %v1301_v8  ;;  %v566_v18 = vmul.f32 0.5, %v1320_v39 }
 0x143   : > { %1010 = verf.f32 %v573_v36  ;;  %v993_v44 = vpop.eup %992  ;;  %v615_v48 = vmul.f32 %v599_v35, %v551_v41  ;;  %v607_v6 = vadd.f32 1.0, %v991_v40 }
 0x144   : > { %1012 = verf.f32 %v581_v38  ;;  %v995_v46 = vpop.eup %994  ;;  %v601_v50 = vadd.f32 1.0, %v993_v44  ;;  %v616_v52 = vmul.f32 %v600_v42, %v552_v45  ;;  %v558_v42 = vmul.f32 0.5, %v1316_v33  ;;  %v662_v44 = vpop.permute.xlu0 %661 }
 0x145   : > { %1014 = verf.f32 %v574_v43  ;;  %v997_v51 = vpop.eup %996  ;;  %v679_v0 = vmul.f32 %v642_v47, %v615_v48  ;;  %v608_v21 = vadd.f32 1.0, %v995_v46  ;;  %v623_v37 = vmul.f32 %v607_v6, %v559_v20 }
 0x146   : > { %v999_v56 = vpop.eup %998  ;;  %v617_v57 = vmul.f32 %v601_v50, %v553_v49  ;;  %v602_v61 = vadd.f32 1.0, %v997_v51  ;;  %1016 = verf.f32 %v582_v53  ;;  %v680_v9 = vmul.f32 %v642_v47, %v616_v52  ;;  %v667_v52 = vpop.permute.xlu1 %666 }
 0x147   : > { %v609_v25 = vadd.f32 1.0, %v999_v56  ;;  %v624_v45 = vmul.f32 %v608_v21, %v560_v14  ;;  %v687_v51 = vmul.f32 %v662_v44, %v623_v37  ;;  %v564_v56 = vmul.f32 0.5, %v1308_v23 }
 0x148   : > { %v1001_v62 = vpop.eup %1000  ;;  %v681_v1 = vmul.f32 %v647_v54, %v617_v57  ;;  %v618_v4 = vmul.f32 %v602_v61, %v554_v60 }
 0x149   : > { %v1003_v58 = vpop.eup %1002  ;;  %v603_v2 = vadd.f32 1.0, %v1001_v62  ;;  %v625_v46 = vmul.f32 %v609_v25, %v561_v19  ;;  %v688_v62 = vmul.f32 %v662_v44, %v624_v45 }
 0x14a   : > { %v1005_v5 = vpop.eup %1004  ;;  %v695_v13 = vadd.f32 %v681_v1, %v679_v0  ;;  %v682_v15 = vmul.f32 %v647_v54, %v618_v4  ;;  %v610_v55 = vadd.f32 1.0, %v1003_v58  ;;  %v565_v54 = vmul.f32 0.5, %v1314_v32 }
 0x14b   : > { %v1007_v11 = vpop.eup %1006  ;;  %v619_v16 = vmul.f32 %v603_v2, %v555_v63  ;;  %v604_v17 = vadd.f32 1.0, %v1005_v5  ;;  %v689_v63 = vmul.f32 %v667_v52, %v625_v46  ;;  %v672_v2 = vpop.permute.xlu0 %671 }
 0x14c   : > { %v1009_v7 = vpop.eup %1008  ;;  %v708_v26 = vadd.f32 %v682_v15, %v680_v9  ;;  %v611_v40 = vadd.f32 1.0, %v1007_v11  ;;  %v626_v53 = vmul.f32 %v610_v55, %v562_v30  ;;  %v677_v11 = vpop.permute.xlu1 %676 }
 0x14d   : > { %v1011_v22 = vpop.eup %1010  ;;  %v683_v27 = vmul.f32 %v652_v12, %v619_v16  ;;  %v620_v28 = vmul.f32 %v604_v17, %v556_v10  ;;  %v612_v48 = vadd.f32 1.0, %v1009_v7  ;;  %v727_v16 = vlaneseq }
 0x14e   : > { %v1013_v29 = vpop.eup %1012  ;;  %v605_v35 = vadd.f32 1.0, %v1011_v22  ;;  %v627_v33 = vmul.f32 %v611_v40, %v563_v3  ;;  %v690_v5 = vmul.f32 %v667_v52, %v626_v53 }
 0x14f   : > { %v1015_v36 = vpop.eup %1014  ;;  %v696_v38 = vadd.f32 %v695_v13, %v683_v27  ;;  %v684_v59 = vmul.f32 %v652_v12, %v620_v28  ;;  %v613_v49 = vadd.f32 1.0, %v1013_v29  ;;  %v628_v58 = vmul.f32 %v612_v48, %v564_v56 }
 0x150   : > { %v621_v41 = vmul.f32 %v605_v35, %v557_v34  ;;  %v606_v43 = vadd.f32 1.0, %v1015_v36  ;;  %v1017_v8 = vpop.eup %1016  ;;  %v691_v6 = vmul.f32 %v672_v2, %v627_v33  ;;  %v728_v21 = vshrl.u32 %v727_v16, 7  ;;  %v725_v34 = vpop.permute.xlu0 %724 }
 0x151   : > { %v709_v47 = vadd.f32 %v708_v26, %v684_v59  ;;  %v614_v61 = vadd.f32 1.0, %v1017_v8  ;;  %v629_v1 = vmul.f32 %v613_v49, %v565_v54  ;;  %v692_v32 = vmul.f32 %v672_v2, %v628_v58 }
 0x152   : > { %v685_v31 = vmul.f32 %v657_v24, %v621_v41  ;;  %v622_v50 = vmul.f32 %v606_v43, %v558_v42  ;;  %v729_v27 = vsub.s32 0, %v728_v21  ;;  %v1083_v28 = vmov 1966171168  }
 0x153   : > { %v630_v23 = vmul.f32 %v614_v61, %v566_v18  ;;  %v693_v12 = vmul.f32 %v677_v11, %v629_v1  ;;  %v737_v29 = vunpack.c.l.s4 %v1083_v28  ;;  %vm753_vm1 = vcmp.lt.s32.totalorder %v727_v16, 256 }
 0x154   : > { %v697_v57 = vadd.f32 %v696_v38, %v685_v31  ;;  %v686_v60 = vmul.f32 %v657_v24, %v622_v50  ;;  %v730_v55 = vrot.slane %v725_v34, %v729_v27 }
 0x155   : > { %v694_v7 = vmul.f32 %v677_v11, %v630_v23  ;;  %v738_v37 = vunpack.c.0.s8 %v737_v29 }
 0x156   : > { %v698_v0 = vadd.f32 %v697_v57, %v687_v51  ;;  %v710_v4 = vadd.f32 %v709_v47, %v686_v60 }
 0x157   : > { %v741_v42 = vsub.s32 %v738_v37, %v728_v21 }
 0x158   : > { %v699_v9 = vadd.f32 %v698_v0, %v689_v63  ;;  %v711_v10 = vadd.f32 %v710_v4, %v688_v62 }
 0x15a   : > { %v700_v13 = vadd.f32 %v699_v9, %v691_v6  ;;  %v712_v15 = vadd.f32 %v711_v10, %v690_v5 }
 0x15c   : > { %v701_v17 = vadd.f32 %v700_v13, %v693_v12  ;;  %v713_v20 = vadd.f32 %v712_v15, %v692_v32 }
 0x15e   : > { %v702_v39 = vrot.slane %v701_v17, 4  ;;  %v714_v14 = vadd.f32 %v713_v20, %v694_v7 }
 0x160   : > { %v703_v22 = vadd.f32 %v702_v39, %v701_v17  ;;  %v715_v24 = vrot.slane %v714_v14, 4 }
 0x162   : > { %v704_v25 = vrot.slane %v703_v22, 2  ;;  %v716_v26 = vadd.f32 %v715_v24, %v714_v14 }
 0x164   : > { %v705_v19 = vadd.f32 %v704_v25, %v703_v22  ;;  %v717_v30 = vrot.slane %v716_v26, 2 }
 0x166   : > { %v706_v35 = vrot.slane %v705_v19, 1  ;;  %v718_v36 = vadd.f32 %v717_v30, %v716_v26 }
 0x168   : > { %v707_v38 = vadd.f32 %v706_v35, %v705_v19  ;;  %v719_v59 = vrot.slane %v718_v36, 1 }
 0x16a   : > { %v720_v40 = vadd.f32 %v719_v59, %v718_v36  ;;  %v731_v41 = vadd.f32 %v730_v55, %v707_v38 }
 0x16c   : > { %v732_v43 = vadd.f32 %v730_v55, %v720_v40 }
 0x16e   : > { %v735_v44 = vcombine.low %v731_v41, %v732_v43 }
 0x170   : > { %v742_v45 = vrot.slane %v735_v44, %v741_v42 }
 0x172   : > { %v749_v46 = vrot.slane %v742_v45, %v741_v42 }
 0x174   : > { %755 = vst.msk [vmem:[%s220_s24] sm:$0x3] %vm753_vm1, %v749_v46 }
 0x175   : > { %1031 = shalt.err (!%p1028_p3)
}
 0x176   : > { %s1032_s6 = scalar_lea.hbm %s1341_s8, 32  ;;  %s1036_s16 = scalar_lea.hbm %s1388_s5, 64 }
 0x177   : > { %p1033_p4 = scmp.ne.s32.totalorder %s1341_s8, %s1032_s6  ;;  %p1037_p9 = scmp.lt.u32.totalorder %s1341_s8, %s1388_s5 }
 0x178   : > { %p1038_p10 = scmp.lt.u32.totalorder %s1036_s16, %s1032_s6  ;;  %p1040_p12 = scmp.lt.u32.totalorder %s1032_s6, %s1341_s8 }
 0x179   : > { %p1034_p7 = pnand %p1033_p4, %p1153_p5 }
 0x17a   : > { %p1039_p11 = por %p1038_p10, %p1037_p9 }
 0x17b   : > { %p1035_p8 = pneg %p1034_p7 }
 0x17c   : > { %p1041_p13 = por %p1040_p12, %p1039_p11 }
 0x17e   : > { %p1042_p0 = pnand %p1041_p13, %p1035_p8 }
 0x180   : > { %1045 = shalt.err (!%p1042_p0)
}
 0x181   : > { %923 = dma.vmem_to_hbm [thread:$0]  (%p1153_p5), %s1343_s26, 32, %s1341_s8, %s757_s9  }
 0x182 PF: > { %p929_p1 = scmp.ge.s32.totalorder %s1080_s23, 2  ;;  %s783_s19 = sand.u32 1, %s1068_s20  }
 0x183   : > { %s784_s4 = scalar_lea.sflag [#allocation4], %s783_s19 }
 0x184   : > { %p926_p2 = pnand %p929_p1, %p1157_p6 }
 0x186   : > { %1063 = dma.done.wait (!%p926_p2), %s784_s4, 32  }
 0x187   : > { %1065 = vsyncadd (!%p926_p2), %s784_s4, 4294967264  ;;  %p17_p3 = scmp.ge.s32.totalorder %s1141_s25, 4   ;;  %s1391_s20 = smov %s1072_s21 }
 0x188   : > { %s1392_s21 = smov %s1076_s22  ;;  %s1393_s22 = smov %s1151_s28 }
 0x189   : > { %s1394_s23 = smov %s1141_s25  ;;  %19 = sbr.rel (!%p17_p3) target bundleno = 6 (0x6), region = 75 }
 0x190   :  { %789 = vsyncpa [#allocation4], 1 }
 0x191   :  { %791 = vsyncpa [#allocation4 + $0x1], 1 }

</bundles_post_ra>
